<compile_context>
chip_gen: v7x
topology: tpu7x:2x2x1
jax: 0.10.0
libtpu: 0.0.40
codegen_flags: <defaults>
</compile_context>

<pallas_src>
import functools
import jax
import jax.numpy as jnp
from jax.experimental import pallas as pl
from jax.experimental.pallas import tpu as pltpu

# ----------------------------- model hyperparameters -----------------------------
VOCAB_SIZE = 28          # vocab (one-hot input size and output size)
NUM_HIDDENS = 32         # rnn hidden size
BATCH = 2
NUM_STEPS = 8

BP = 8                   # batch padded to 8 -> sublane-aligned per-step tiles
VP = 128                 # logits padded to 128 lanes -> lane-dense output store


# ----------------------------- fused Pallas kernel -----------------------------
def _rnn_forward_kernel(tok_ref, wih_ref, whh_ref, b_ref, h0_ref,
                        wlin_ref, blin_ref,
                        out_ref, hT_ref, *, steps, bp):
    """Whole RNNModel forward for one (padded) batch.

    tok_ref : (steps*bp, 1) int32   time-major, batch-padded token ids
    wih_ref : (V, H) f32            input->hidden weight (math layout, = W_ih^T)
    whh_ref : (H, H) f32            hidden->hidden weight (math layout, = W_hh^T)
    b_ref   : (1, H) f32            b_ih + b_hh (folded once at param-prep time)
    h0_ref  : (bp, H) f32           initial hidden state (padded batch)
    wlin_ref: (H, 128) f32          output projection, zero-padded to 128 lanes
    blin_ref: (1, 128) f32          output bias, zero-padded
    out_ref : (steps*bp, 128) f32   padded logits (lane dense)
    hT_ref  : (bp, H) f32           final hidden state
    """
    mb = steps * bp
    v = wih_ref.shape[0]

    # ---- one-hot built in-kernel (no HBM one-hot materialization) ----
    tok = tok_ref[...]                                               # (mb, 1) int32
    onehot = (jax.lax.broadcasted_iota(jnp.int32, (mb, v), 1) == tok).astype(jnp.float32)

    # ---- fused input projection for ALL timesteps: one MXU pass, kept in vregs ----
    xp = (jnp.dot(onehot, wih_ref[...], preferred_element_type=jnp.float32)
          + b_ref[...])                                              # (mb, H)

    # ---- hoist Whh once; it stays resident across the whole serial chain ----
    whh = whh_ref[...]                                               # (H, H)

    # ---- statically unrolled recurrence: h_t = tanh(xproj_t + h_{t-1} @ Whh^T) ----
    # All intermediates stay in vregs (~16 vregs total): no VMEM scratch stores.
    h = h0_ref[...]                                                  # (bp, H)
    ys = []
    for t in range(steps):
        xt = xp[t * bp:(t + 1) * bp, :]                              # static, 8-row tile slice
        h = jnp.tanh(xt + jnp.dot(h, whh, preferred_element_type=jnp.float32))
        ys.append(h)
    hT_ref[...] = h

    # ---- fused output projection, lane-dense (128 lanes): one MXU pass ----
    y = jnp.concatenate(ys, axis=0)                                  # (mb, H) in vregs
    out_ref[...] = (jnp.dot(y, wlin_ref[...], preferred_element_type=jnp.float32)
                    + blin_ref[...])


# ----------------------------- parameter preparation (once per model) -----------------------------
def prepare_params(params):
    """Fold biases, pad the vocab projection to 128 lanes, cast to f32 -- ONCE.

    Keeps all constant padding / casting off the per-call forward path."""
    H = params["whh"].shape[0]
    V = params["wih"].shape[0]
    return {
        "wih": params["wih"].astype(jnp.float32),                              # (V, H)
        "whh": params["whh"].astype(jnp.float32),                              # (H, H)
        "b": (params["bih"] + params["bhh"]).reshape(1, H).astype(jnp.float32),  # (1, H)
        "wlin_pad": jnp.zeros((H, VP), jnp.float32).at[:, :V].set(
            params["wlin"].astype(jnp.float32)),                               # (H, 128)
        "blin_pad": jnp.zeros((1, VP), jnp.float32).at[:, :V].set(
            params["blin"].reshape(1, V).astype(jnp.float32)),                 # (1, 128)
    }


# ----------------------------- forward wrapper (jitted, per-call work only) -----------------------------
@jax.jit
def rnn_model_forward(prepped, inputs, state):
    """Mirrors RNNModel.forward. inputs (B, S) int, state (1, B, H) f32.

    Returns (output (S*B, V), new_state (1, B, H))."""
    B, S = inputs.shape
    V, H = prepped["wih"].shape

    # time-major, batch-padded token ids, flattened to a (S*BP, 1) column
    tok_pad = jnp.zeros((S, BP), jnp.int32).at[:, :B].set(inputs.astype(jnp.int32).T)
    tok_col = tok_pad.reshape(S * BP, 1)

    # padded initial hidden state
    h0 = jnp.zeros((BP, H), jnp.float32).at[:B, :].set(state[0].astype(jnp.float32))

    kernel = functools.partial(_rnn_forward_kernel, steps=S, bp=BP)

    out_pad, hT = pl.pallas_call(
        kernel,
        out_shape=(
            jax.ShapeDtypeStruct((S * BP, VP), jnp.float32),
            jax.ShapeDtypeStruct((BP, H), jnp.float32),
        ),
        grid=(1,),
        in_specs=[
            pl.BlockSpec((S * BP, 1), lambda i: (0, 0)),   # token ids
            pl.BlockSpec((V, H), lambda i: (0, 0)),        # Wih
            pl.BlockSpec((H, H), lambda i: (0, 0)),        # Whh
            pl.BlockSpec((1, H), lambda i: (0, 0)),        # bih+bhh
            pl.BlockSpec((BP, H), lambda i: (0, 0)),       # h0
            pl.BlockSpec((H, VP), lambda i: (0, 0)),       # Wlin (padded)
            pl.BlockSpec((1, VP), lambda i: (0, 0)),       # blin (padded)
        ],
        out_specs=(
            pl.BlockSpec((S * BP, VP), lambda i: (0, 0)),
            pl.BlockSpec((BP, H), lambda i: (0, 0)),
        ),
        compiler_params=pltpu.CompilerParams(dimension_semantics=("arbitrary",)),
    )(tok_col, prepped["wih"], prepped["whh"], prepped["b"], h0,
      prepped["wlin_pad"], prepped["blin_pad"])

    # unpad: (S*BP, 128) -> (S, BP, 128) -> real batch / vocab -> (S*B, V)
    output = out_pad.reshape(S, BP, VP)[:, :B, :V].reshape(S * B, V)
    new_state = hT[:B, :].reshape(1, B, H)
    return output, new_state


# ----------------------------- pure-JAX reference -----------------------------
def rnn_model_reference(params, inputs, state):
    B, S = inputs.shape
    V = params["wih"].shape[0]
    X = jax.nn.one_hot(inputs.T, V, dtype=jnp.float32)      # (S, B, V)
    h = state[0].astype(jnp.float32)                        # (B, H)
    ys = []
    for t in range(S):
        h = jnp.tanh(X[t] @ params["wih"] + params["bih"]
                     + h @ params["whh"] + params["bhh"])
        ys.append(h)
    Y = jnp.stack(ys, axis=0)                               # (S, B, H)
    out = Y.reshape(S * B, -1) @ params["wlin"] + params["blin"]
    return out, h[None]


# ----------------------------- main -----------------------------
if __name__ == "__main__":
    key = jax.random.PRNGKey(0)
    k_tok, *k_ws = jax.random.split(key, 7)
    H, V = NUM_HIDDENS, VOCAB_SIZE
    bound = 1.0 / (H ** 0.5)   # PyTorch nn.RNN / nn.Linear default init range

    def uni(k, shape):
        return jax.random.uniform(k, shape, jnp.float32, -bound, bound)

    params = {
        "wih": uni(k_ws[0], (V, H)),     # = W_ih^T
        "whh": uni(k_ws[1], (H, H)),     # = W_hh^T
        "bih": uni(k_ws[2], (H,)),
        "bhh": uni(k_ws[3], (H,)),
        "wlin": uni(k_ws[4], (H, V)),    # = W_linear^T
        "blin": uni(k_ws[5], (V,)),
    }

    inputs = jax.random.randint(k_tok, (BATCH, NUM_STEPS), 0, V)
    state = jnp.zeros((1, BATCH, H), jnp.float32)            # begin_state()

    prepped = prepare_params(params)                         # once, off the call path
    jax.block_until_ready(prepped)

    out, new_state = rnn_model_forward(prepped, inputs, state)
    jax.block_until_ready(out)
    jax.block_until_ready(new_state)

    ref_out, ref_state = rnn_model_reference(params, inputs, state)

    assert out.shape == (NUM_STEPS * BATCH, V)
    assert new_state.shape == (1, BATCH, H)
    assert jnp.allclose(out, ref_out, atol=1e-4, rtol=1e-4)
    assert jnp.allclose(new_state, ref_state, atol=1e-4, rtol=1e-4)
    print("KERNEL_OK")
</pallas_src>

<mosaic_0001>
module attributes {stable_mosaic.version = 11 : i64} {
  func.func @_rnn_forward_kernel(%arg0: i32, %arg1: memref<64x1xi32, #tpu.memory_space<vmem>>, %arg2: memref<28x32xf32, #tpu.memory_space<vmem>>, %arg3: memref<32x32xf32, #tpu.memory_space<vmem>>, %arg4: memref<1x32xf32, #tpu.memory_space<vmem>>, %arg5: memref<8x32xf32, #tpu.memory_space<vmem>>, %arg6: memref<32x128xf32, #tpu.memory_space<vmem>>, %arg7: memref<1x128xf32, #tpu.memory_space<vmem>>, %arg8: memref<64x128xf32, #tpu.memory_space<vmem>>, %arg9: memref<8x32xf32, #tpu.memory_space<vmem>>) attributes {dimension_semantics = [#tpu.dimension_semantics<arbitrary>], iteration_bounds = array<i64: 1>, scalar_prefetch = 0 : i64, scratch_operands = 0 : i64, tpu.core_type = #tpu.core_type<tc>, window_params = [{pipeline_mode = #tpu.pipeline_mode<synchronous>, transform_indices = @transform_0, window_bounds = array<i64: 64, 1>}, {pipeline_mode = #tpu.pipeline_mode<synchronous>, transform_indices = @transform_1, window_bounds = array<i64: 28, 32>}, {pipeline_mode = #tpu.pipeline_mode<synchronous>, transform_indices = @transform_2, window_bounds = array<i64: 32, 32>}, {pipeline_mode = #tpu.pipeline_mode<synchronous>, transform_indices = @transform_3, window_bounds = array<i64: 1, 32>}, {pipeline_mode = #tpu.pipeline_mode<synchronous>, transform_indices = @transform_4, window_bounds = array<i64: 8, 32>}, {pipeline_mode = #tpu.pipeline_mode<synchronous>, transform_indices = @transform_5, window_bounds = array<i64: 32, 128>}, {pipeline_mode = #tpu.pipeline_mode<synchronous>, transform_indices = @transform_6, window_bounds = array<i64: 1, 128>}, {pipeline_mode = #tpu.pipeline_mode<synchronous>, transform_indices = @transform_7, window_bounds = array<i64: 64, 128>}, {pipeline_mode = #tpu.pipeline_mode<synchronous>, transform_indices = @transform_8, window_bounds = array<i64: 8, 32>}]} {
    %c0 = arith.constant 0 : index
    %c0_0 = arith.constant 0 : index
    %0 = vector.load %arg1[%c0, %c0_0] : memref<64x1xi32, #tpu.memory_space<vmem>>, vector<64x1xi32>
    %1 = tpu.iota {dimensions = array<i32: 1>} : vector<64x28xi32>
    %2 = vector.broadcast %0 : vector<64x1xi32> to vector<64x28xi32>
    %3 = arith.cmpi eq, %1, %2 : vector<64x28xi32>
    %4 = arith.extui %3 : vector<64x28xi1> to vector<64x28xi32>
    %5 = arith.sitofp %4 : vector<64x28xi32> to vector<64x28xf32>
    %c0_1 = arith.constant 0 : index
    %c0_2 = arith.constant 0 : index
    %6 = vector.load %arg2[%c0_1, %c0_2] : memref<28x32xf32, #tpu.memory_space<vmem>>, vector<28x32xf32>
    %cst = arith.constant dense<0.000000e+00> : vector<64x32xf32>
    %7 = tpu.matmul %5, %6, %cst {dimension_numbers = #tpu.dot_dimension_numbers<[1], [0], [0], [1], [0, 0, 1, 1], [], []>} : vector<64x28xf32>, vector<28x32xf32>, vector<64x32xf32> -> vector<64x32xf32>
    %c0_3 = arith.constant 0 : index
    %c0_4 = arith.constant 0 : index
    %8 = vector.load %arg4[%c0_3, %c0_4] : memref<1x32xf32, #tpu.memory_space<vmem>>, vector<1x32xf32>
    %9 = vector.broadcast %8 : vector<1x32xf32> to vector<64x32xf32>
    %10 = arith.addf %7, %9 : vector<64x32xf32>
    %c0_5 = arith.constant 0 : index
    %c0_6 = arith.constant 0 : index
    %11 = vector.load %arg3[%c0_5, %c0_6] : memref<32x32xf32, #tpu.memory_space<vmem>>, vector<32x32xf32>
    %c0_7 = arith.constant 0 : index
    %c0_8 = arith.constant 0 : index
    %12 = vector.load %arg5[%c0_7, %c0_8] : memref<8x32xf32, #tpu.memory_space<vmem>>, vector<8x32xf32>
    %13 = vector.extract_strided_slice %10 {offsets = [0, 0], sizes = [8, 32], strides = [1, 1]} : vector<64x32xf32> to vector<8x32xf32>
    %cst_9 = arith.constant dense<0.000000e+00> : vector<8x32xf32>
    %14 = tpu.matmul %12, %11, %cst_9 {dimension_numbers = #tpu.dot_dimension_numbers<[1], [0], [0], [1], [0, 0, 1, 1], [], []>} : vector<8x32xf32>, vector<32x32xf32>, vector<8x32xf32> -> vector<8x32xf32>
    %15 = arith.addf %13, %14 : vector<8x32xf32>
    %16 = math.tanh %15 : vector<8x32xf32>
    %17 = vector.extract_strided_slice %10 {offsets = [8, 0], sizes = [8, 32], strides = [1, 1]} : vector<64x32xf32> to vector<8x32xf32>
    %cst_10 = arith.constant dense<0.000000e+00> : vector<8x32xf32>
    %18 = tpu.matmul %16, %11, %cst_10 {dimension_numbers = #tpu.dot_dimension_numbers<[1], [0], [0], [1], [0, 0, 1, 1], [], []>} : vector<8x32xf32>, vector<32x32xf32>, vector<8x32xf32> -> vector<8x32xf32>
    %19 = arith.addf %17, %18 : vector<8x32xf32>
    %20 = math.tanh %19 : vector<8x32xf32>
    %21 = vector.extract_strided_slice %10 {offsets = [16, 0], sizes = [8, 32], strides = [1, 1]} : vector<64x32xf32> to vector<8x32xf32>
    %cst_11 = arith.constant dense<0.000000e+00> : vector<8x32xf32>
    %22 = tpu.matmul %20, %11, %cst_11 {dimension_numbers = #tpu.dot_dimension_numbers<[1], [0], [0], [1], [0, 0, 1, 1], [], []>} : vector<8x32xf32>, vector<32x32xf32>, vector<8x32xf32> -> vector<8x32xf32>
    %23 = arith.addf %21, %22 : vector<8x32xf32>
    %24 = math.tanh %23 : vector<8x32xf32>
    %25 = vector.extract_strided_slice %10 {offsets = [24, 0], sizes = [8, 32], strides = [1, 1]} : vector<64x32xf32> to vector<8x32xf32>
    %cst_12 = arith.constant dense<0.000000e+00> : vector<8x32xf32>
    %26 = tpu.matmul %24, %11, %cst_12 {dimension_numbers = #tpu.dot_dimension_numbers<[1], [0], [0], [1], [0, 0, 1, 1], [], []>} : vector<8x32xf32>, vector<32x32xf32>, vector<8x32xf32> -> vector<8x32xf32>
    %27 = arith.addf %25, %26 : vector<8x32xf32>
    %28 = math.tanh %27 : vector<8x32xf32>
    %29 = vector.extract_strided_slice %10 {offsets = [32, 0], sizes = [8, 32], strides = [1, 1]} : vector<64x32xf32> to vector<8x32xf32>
    %cst_13 = arith.constant dense<0.000000e+00> : vector<8x32xf32>
    %30 = tpu.matmul %28, %11, %cst_13 {dimension_numbers = #tpu.dot_dimension_numbers<[1], [0], [0], [1], [0, 0, 1, 1], [], []>} : vector<8x32xf32>, vector<32x32xf32>, vector<8x32xf32> -> vector<8x32xf32>
    %31 = arith.addf %29, %30 : vector<8x32xf32>
    %32 = math.tanh %31 : vector<8x32xf32>
    %33 = vector.extract_strided_slice %10 {offsets = [40, 0], sizes = [8, 32], strides = [1, 1]} : vector<64x32xf32> to vector<8x32xf32>
    %cst_14 = arith.constant dense<0.000000e+00> : vector<8x32xf32>
    %34 = tpu.matmul %32, %11, %cst_14 {dimension_numbers = #tpu.dot_dimension_numbers<[1], [0], [0], [1], [0, 0, 1, 1], [], []>} : vector<8x32xf32>, vector<32x32xf32>, vector<8x32xf32> -> vector<8x32xf32>
    %35 = arith.addf %33, %34 : vector<8x32xf32>
    %36 = math.tanh %35 : vector<8x32xf32>
    %37 = vector.extract_strided_slice %10 {offsets = [48, 0], sizes = [8, 32], strides = [1, 1]} : vector<64x32xf32> to vector<8x32xf32>
    %cst_15 = arith.constant dense<0.000000e+00> : vector<8x32xf32>
    %38 = tpu.matmul %36, %11, %cst_15 {dimension_numbers = #tpu.dot_dimension_numbers<[1], [0], [0], [1], [0, 0, 1, 1], [], []>} : vector<8x32xf32>, vector<32x32xf32>, vector<8x32xf32> -> vector<8x32xf32>
    %39 = arith.addf %37, %38 : vector<8x32xf32>
    %40 = math.tanh %39 : vector<8x32xf32>
    %41 = vector.extract_strided_slice %10 {offsets = [56, 0], sizes = [8, 32], strides = [1, 1]} : vector<64x32xf32> to vector<8x32xf32>
    %cst_16 = arith.constant dense<0.000000e+00> : vector<8x32xf32>
    %42 = tpu.matmul %40, %11, %cst_16 {dimension_numbers = #tpu.dot_dimension_numbers<[1], [0], [0], [1], [0, 0, 1, 1], [], []>} : vector<8x32xf32>, vector<32x32xf32>, vector<8x32xf32> -> vector<8x32xf32>
    %43 = arith.addf %41, %42 : vector<8x32xf32>
    %44 = math.tanh %43 : vector<8x32xf32>
    %c0_17 = arith.constant 0 : index
    %c0_18 = arith.constant 0 : index
    %45 = vector.load %arg9[%c0_17, %c0_18] : memref<8x32xf32, #tpu.memory_space<vmem>>, vector<8x32xf32>
    tpu.vector_store %arg9[%c0_17, %c0_18], %44 {strides = array<i32>} : memref<8x32xf32, #tpu.memory_space<vmem>>, vector<8x32xf32>,
    %46 = tpu.concatenate %16, %20, %24, %28, %32, %36, %40, %44 in 0 : vector<8x32xf32>, vector<8x32xf32>, vector<8x32xf32>, vector<8x32xf32>, vector<8x32xf32>, vector<8x32xf32>, vector<8x32xf32>, vector<8x32xf32> -> vector<64x32xf32>
    %c0_19 = arith.constant 0 : index
    %c0_20 = arith.constant 0 : index
    %47 = vector.load %arg6[%c0_19, %c0_20] : memref<32x128xf32, #tpu.memory_space<vmem>>, vector<32x128xf32>
    %cst_21 = arith.constant dense<0.000000e+00> : vector<64x128xf32>
    %48 = tpu.matmul %46, %47, %cst_21 {dimension_numbers = #tpu.dot_dimension_numbers<[1], [0], [0], [1], [0, 0, 1, 1], [], []>} : vector<64x32xf32>, vector<32x128xf32>, vector<64x128xf32> -> vector<64x128xf32>
    %c0_22 = arith.constant 0 : index
    %c0_23 = arith.constant 0 : index
    %49 = vector.load %arg7[%c0_22, %c0_23] : memref<1x128xf32, #tpu.memory_space<vmem>>, vector<1x128xf32>
    %50 = vector.broadcast %49 : vector<1x128xf32> to vector<64x128xf32>
    %51 = arith.addf %48, %50 : vector<64x128xf32>
    %c0_24 = arith.constant 0 : index
    %c0_25 = arith.constant 0 : index
    %52 = vector.load %arg8[%c0_24, %c0_25] : memref<64x128xf32, #tpu.memory_space<vmem>>, vector<64x128xf32>
    tpu.vector_store %arg8[%c0_24, %c0_25], %51 {strides = array<i32>} : memref<64x128xf32, #tpu.memory_space<vmem>>, vector<64x128xf32>,
    return
  }
  func.func @transform_0(%arg0: i32) -> (i32, i32) {
    %c0_i32 = arith.constant 0 : i32
    %c0_i32_0 = arith.constant 0 : i32
    %c0_i32_1 = arith.constant 0 : i32
    return %c0_i32, %c0_i32_0 : i32, i32
  }
  func.func @transform_1(%arg0: i32) -> (i32, i32) {
    %c0_i32 = arith.constant 0 : i32
    %c0_i32_0 = arith.constant 0 : i32
    %c0_i32_1 = arith.constant 0 : i32
    return %c0_i32, %c0_i32_0 : i32, i32
  }
  func.func @transform_2(%arg0: i32) -> (i32, i32) {
    %c0_i32 = arith.constant 0 : i32
    %c0_i32_0 = arith.constant 0 : i32
    %c0_i32_1 = arith.constant 0 : i32
    return %c0_i32, %c0_i32_0 : i32, i32
  }
  func.func @transform_3(%arg0: i32) -> (i32, i32) {
    %c0_i32 = arith.constant 0 : i32
    %c0_i32_0 = arith.constant 0 : i32
    %c0_i32_1 = arith.constant 0 : i32
    return %c0_i32, %c0_i32_0 : i32, i32
  }
  func.func @transform_4(%arg0: i32) -> (i32, i32) {
    %c0_i32 = arith.constant 0 : i32
    %c0_i32_0 = arith.constant 0 : i32
    %c0_i32_1 = arith.constant 0 : i32
    return %c0_i32, %c0_i32_0 : i32, i32
  }
  func.func @transform_5(%arg0: i32) -> (i32, i32) {
    %c0_i32 = arith.constant 0 : i32
    %c0_i32_0 = arith.constant 0 : i32
    %c0_i32_1 = arith.constant 0 : i32
    return %c0_i32, %c0_i32_0 : i32, i32
  }
  func.func @transform_6(%arg0: i32) -> (i32, i32) {
    %c0_i32 = arith.constant 0 : i32
    %c0_i32_0 = arith.constant 0 : i32
    %c0_i32_1 = arith.constant 0 : i32
    return %c0_i32, %c0_i32_0 : i32, i32
  }
  func.func @transform_7(%arg0: i32) -> (i32, i32) {
    %c0_i32 = arith.constant 0 : i32
    %c0_i32_0 = arith.constant 0 : i32
    %c0_i32_1 = arith.constant 0 : i32
    return %c0_i32, %c0_i32_0 : i32, i32
  }
  func.func @transform_8(%arg0: i32) -> (i32, i32) {
    %c0_i32 = arith.constant 0 : i32
    %c0_i32_0 = arith.constant 0 : i32
    %c0_i32_1 = arith.constant 0 : i32
    return %c0_i32, %c0_i32_0 : i32, i32
  }
}

</mosaic_0001>

<bundles_post_ra>
// kernel: rnn_model_forward.1
= control target key start
LH: loop header
LB: loop body
LE: loop exit
PB: predicated region body
PF: predicated region fallthrough
CT: control target
= control target key end

     0   :  { %v1293_v0 = vmov 0   ;;  %vm122_vm0 = vcmask 1043456   ;;  %vm1294_vm1 = vmmov 1   ;;  %v1295_v15 = vmov 0.0|0.0   ;;  %s1537_s0 = inlined_call_operand.vmem [shape: s32[64,1], index: 0, kind: input, shape index: {}]   ;;  %s1538_s1 = inlined_call_operand.vmem [shape: f32[28,32], index: 1, kind: input, shape index: {}]   ;;  %s1539_s2 = inlined_call_operand.vmem [shape: f32[32,32], index: 2, kind: input, shape index: {}]   ;;  %s1540_s4 = inlined_call_operand.vmem [shape: f32[8,32], index: 4, kind: input, shape index: {}]   ;;  %s1541_s3 = inlined_call_operand.vmem [shape: f32[1,32], index: 3, kind: input, shape index: {}]   ;;  %s1542_s5 = inlined_call_operand.vmem [shape: f32[32,128], index: 5, kind: input, shape index: {}]   ;;  %s1543_s6 = inlined_call_operand.vmem [shape: f32[1,128], index: 6, kind: input, shape index: {}]   ;;  %s1544_s7 = inlined_call_operand.vmem [shape: f32[64,128], index: 7, kind: output, shape index: {0}]   ;;  %s1545_s8 = inlined_call_operand.vmem [shape: f32[8,32], index: 8, kind: output, shape index: {1}]  }
   0x1   :  { %1276 = vset.pattern.permute.xlu1 %v1293_v0  ;;  %1275 = vset.pattern.permute.xlu0 %v1293_v0  ;;  %v34_v1 = vld [vmem:[%s1537_s0 + $0x30] sm:$0xff]  ;;  %v32_v2 = vld [vmem:[%s1537_s0 + $0x20] sm:$0xff]  ;;  %v33_v3 = vld [vmem:[%s1537_s0 + $0x28] sm:$0xff]  ;;  %v36_v16 = vlaneseq  ;;  %vm97_vm3 = vcmask 228352   ;;  %v1296_v22 = vmov 0.0   ;;  %vm1297_vm10 = vmmov 0  }
   0x2   :  { %57 = vperm.xlu1 %1276, %v34_v1   ;;  %51 = vperm.xlu0 %1275, %v32_v2   ;;  %v28_v4 = vld [vmem:[%s1537_s0] sm:$0xff]  ;;  %v87_v6 = vld [vmem:[%s1538_s1 + $0x8] sm:$0xff]  ;;  %v88_v7 = vld [vmem:[%s1538_s1 + $0x10] sm:$0xff]  ;;  %vm236_vm11 = vcmask 261120  }
   0x3   :  { %v86_v5 = vld [vmem:[%s1538_s1] sm:$0xff]  ;;  %v89_v8 = vld [vmem:[%s1538_s1 + $0x18] sm:$0xf]  ;;  %vm1205_vm2 = vmpackc.low %vm122_vm0, %vm1294_vm1  ;;  %v37_v17 = vand.u32 127, %v36_v16 }
   0x4   :  { %v1200_v9 = vpack.c.bf16 %v87_v6, %v86_v5  ;;  %v1204_v10 = vpack.c.bf16 %v89_v8, %v88_v7  ;;  %v35_v11 = vld [vmem:[%s1537_s0 + $0x38] sm:$0xff]  ;;  %v29_v12 = vld [vmem:[%s1537_s0 + $0x8] sm:$0xff]  ;;  %v30_v13 = vld [vmem:[%s1537_s0 + $0x10] sm:$0xff] }
   0x5   :  { %v31_v14 = vld [vmem:[%s1537_s0 + $0x18] sm:$0xff]  ;;  %v231_v20 = vld [vmem:[%s1539_s2] sm:$0xff]  ;;  %v232_v21 = vld [vmem:[%s1539_s2 + $0x8] sm:$0xff] }
   0x6   :  { %54 = vperm.xlu0 %1275, %v33_v3   ;;  %39 = vperm.xlu1 %1276, %v28_v4   ;;  %v1389_v26 = vpack.c.bf16 %v232_v21, %v231_v20  ;;  %v233_v27 = vld [vmem:[%s1539_s2 + $0x10] sm:$0xff]  ;;  %v234_v28 = vld [vmem:[%s1539_s2 + $0x18] sm:$0xff]  ;;  %v235_v39 = vld [vmem:[%s1540_s4] sm:$0xff] }
   0x7   :  { %1266 = vmatprep.subr.bf16.mxu1 %v1200_v9  ;;  %1201 = vmatprep.subr.bf16.mxu0 %v1200_v9  ;;  %v1404_v34 = vpack.c.bf16 %v234_v28, %v233_v27  ;;  %v981_v42 = vld [vmem:[%s1541_s3] ss:$0 sm:$0xff] }
   0x8   :  { %1268 = vmatpush3.bf16.msra.mxu1 %v1200_v9  ;;  %1203 = vmatpush3.bf16.msra.mxu0 %v1200_v9  ;;  %v838_v16 = vld [vmem:[%s1542_s5] sm:$0xff] }
   0x9   :  { %1267 = vmatprep.subr.msk.bf16.mxu1 %vm1205_vm2, %v1204_v10  ;;  %1206 = vmatprep.subr.msk.bf16.mxu0 %vm1205_vm2, %v1204_v10  ;;  %v999_v28 = vld [vmem:[%s1543_s6] ss:$0 sm:$0xff] }
   0xa   :  { %60 = vperm.xlu0 %1275, %v35_v11   ;;  %42 = vperm.xlu1 %1276, %v29_v12  }
   0xc   :  { %1269 = vmatpush3.bf16.msk.msra.mxu1 %vm1205_vm2, %v1204_v10  ;;  %1209 = vmatpush3.bf16.msk.msra.mxu0 %vm1205_vm2, %v1204_v10 }
   0xd   :  { %1210 = vmatprep.subr.bf16.mxu1 %v1295_v15  ;;  %1222 = vmatprep.subr.bf16.mxu0 %v1295_v15 }
   0xe   :  { %45 = vperm.xlu0 %1275, %v30_v13   ;;  %48 = vperm.xlu1 %1276, %v31_v14  }
  0x81   :  { %v58_v18 = vpop.permute.xlu1 %57  ;;  %v52_v19 = vpop.permute.xlu0 %51 }
  0x82   :  { %vm66_vm4 = vcmp.eq.s32.totalorder %v37_v17, %v52_v19  ;;  %vm68_vm5 = vcmp.eq.s32.totalorder %v37_v17, %v58_v18 }
  0x83   :  { %v977_v23 = vsel %vm66_vm4, 1.0, %v1296_v22  ;;  %v979_v31 = vsel %vm68_vm5, 1.0, %v1296_v22 }
  0x84   :  { %1086 = vmatprep.mubr.msk.f32.mxu1 %vm97_vm3, %v977_v23 }
  0x85   :  { %v55_v24 = vpop.permute.xlu0 %54  ;;  %v40_v25 = vpop.permute.xlu1 %39 }
  0x86   :  { %vm67_vm6 = vcmp.eq.s32.totalorder %v37_v17, %v55_v24  ;;  %vm62_vm7 = vcmp.eq.s32.totalorder %v37_v17, %v40_v25 }
  0x87   :  { %v978_v29 = vsel %vm67_vm6, 1.0, %v1296_v22  ;;  %v973_v30 = vsel %vm62_vm7, 1.0, %v1296_v22 }
  0x88   :  { %1080 = vmatprep.mubr.msk.f32.mxu0 %vm97_vm3, %v973_v30  ;;  %1087 = vmatmul.mubr.msk.f32.vlgmr.msra.gmra.mrb[0].mxu1 %vm97_vm3, %v978_v29 }
  0x89   :  { %1212 = vmatpush3.bf16.msra.mxu1 %v1389_v26  ;;  %1089 = vmatprep.mubr.msk.f32.mxu1 %vm97_vm3, %v979_v31  ;;  %v61_v32 = vpop.permute.xlu0 %60  ;;  %v43_v33 = vpop.permute.xlu1 %42 }
  0x8a   :  { %vm69_vm8 = vcmp.eq.s32.totalorder %v37_v17, %v61_v32  ;;  %vm63_vm9 = vcmp.eq.s32.totalorder %v37_v17, %v43_v33  ;;  %1213 = vmatprep.subr.bf16.mxu1 %v1295_v15 }
  0x8b   :  { %v980_v35 = vsel %vm69_vm8, 1.0, %v1296_v22  ;;  %v974_v36 = vsel %vm63_vm9, 1.0, %v1296_v22 }
  0x8c   :  { %1081 = vmatmul.mubr.msk.f32.vlgmr.msra.gmra.mrb[0].mxu0 %vm97_vm3, %v974_v36  ;;  %1090 = vmatmul.mubr.msk.f32.gmra.mrb[2].mxu1 %vm97_vm3, %v980_v35 }
  0x8d   :  { %1215 = vmatpush3.bf16.msra.mxu1 %v1404_v34  ;;  %v46_v37 = vpop.permute.xlu0 %45  ;;  %v49_v38 = vpop.permute.xlu1 %48  ;;  %1100 = vmatprep.mubr.msk.f32.mxu1 %vm1297_vm10, %v1296_v22 }
  0x8e   :  { %vm64_vm12 = vcmp.eq.s32.totalorder %v37_v17, %v46_v37  ;;  %vm65_vm13 = vcmp.eq.s32.totalorder %v37_v17, %v49_v38  ;;  %1216 = vmatprep.subr.bf16.mxu1 %v1295_v15  ;;  %1224 = vmatpush3.bf16.msra.mxu0 %v1389_v26  ;;  %v839_v17 = vld [vmem:[%s1542_s5 + $0x8] sm:$0xff] }
  0x8f   :  { %v975_v40 = vsel %vm64_vm12, 1.0, %v1296_v22  ;;  %v976_v41 = vsel %vm65_vm13, 1.0, %v1296_v22  ;;  %1225 = vmatprep.subr.bf16.mxu0 %v1295_v15  ;;  %v1258_v18 = vpack.c.bf16 %v839_v17, %v838_v16 }
  0x90   :  { %1083 = vmatprep.mubr.msk.f32.mxu0 %vm97_vm3, %v975_v40  ;;  %1101 = vmatmul.mubr.msk.f32.vlgmr.msra.gmra.mrb[4].mxu1 %vm236_vm11, %v235_v39 }
  0x91   :  { %1084 = vmatmul.mubr.msk.f32.gmra.mrb[2].mxu0 %vm97_vm3, %v976_v41  ;;  %1218 = vmatpush3.bf16.msra.mxu1 %v1389_v26 }
  0x92   :  { %1219 = vmatprep.subr.bf16.mxu1 %v1295_v15  ;;  %1111 = vmatprep.mubr.msk.f32.mxu1 %vm1297_vm10, %v1296_v22 }
  0x93   :  { %1227 = vmatpush3.bf16.msra.mxu0 %v1404_v34  ;;  %1122 = vmatprep.mubr.msk.f32.mxu0 %vm1297_vm10, %v1296_v22 }
  0x94   :  { %1234 = vmatprep.subr.bf16.mxu0 %v1295_v15 }
  0x95   :  { %1221 = vmatpush3.bf16.msra.mxu1 %v1404_v34 }
  0x96   :  { %1228 = vmatprep.subr.bf16.mxu1 %v1295_v15 }
 0x15b   :  { %v1088_v43 = vpop.f32.mrb[0].mxu1 }
 0x15c   :  { %v1438_v44 = vadd.f32 %v1088_v43, %v981_v42  ;;  %v212_v45 = vpop.f32.mrb[1].mxu1 }
 0x15d   :  { %v213_v46 = vadd.f32 %v981_v42, %v212_v45 }
 0x15f   :  { %v1082_v47 = vpop.f32.mrb[0].mxu0  ;;  %v1091_v48 = vpop.f32.mrb[2].mxu1 }
 0x160   :  { %v198_v49 = vadd.f32 %v1082_v47, %v981_v42  ;;  %v1440_v50 = vadd.f32 %v1091_v48, %v981_v42  ;;  %v192_v51 = vpop.f32.mrb[1].mxu0  ;;  %v222_v52 = vpop.f32.mrb[3].mxu1 }
 0x161   :  { %v193_v53 = vadd.f32 %v981_v42, %v192_v51  ;;  %v1442_v54 = vadd.f32 %v981_v42, %v222_v52 }
 0x163   :  { %v306_v55 = vpop.f32.mrb[4].mxu1 }
 0x164   :  { %v310_v56 = vadd.f32 %v306_v55, %v193_v53  ;;  %v1085_v57 = vpop.f32.mrb[2].mxu0  ;;  %v1102_v58 = vpop.f32.mrb[5].mxu1 }
 0x165   :  { %v208_v59 = vadd.f32 %v1085_v57, %v981_v42  ;;  %v202_v60 = vpop.f32.mrb[3].mxu0 }
 0x166   :  { %1277 = vtanh.f32 %v310_v56  ;;  %v203_v61 = vadd.f32 %v981_v42, %v202_v60 }
 0x170   :  { %v1444_v62 = vpop.eup %1277 }
 0x171   :  { %1112 = vmatmul.mubr.msk.f32.vlgmr.msra.gmra.mrb[6].mxu1 %vm236_vm11, %v1444_v62 }
 0x172   :  { %1230 = vmatpush3.bf16.msra.mxu1 %v1389_v26  ;;  %1133 = vmatprep.mubr.msk.f32.mxu1 %vm1297_vm10, %v1296_v22 }
 0x173   :  { %1231 = vmatprep.subr.bf16.mxu1 %v1295_v15 }
 0x176   :  { %1233 = vmatpush3.bf16.msra.mxu1 %v1404_v34 }
 0x177   :  { %1240 = vmatprep.subr.bf16.mxu1 %v1295_v15 }
 0x244   :  { %v381_v63 = vpop.f32.mrb[6].mxu1 }
 0x245   :  { %v385_v0 = vadd.f32 %v381_v63, %v198_v49  ;;  %v1113_v1 = vpop.f32.mrb[7].mxu1 }
 0x247   :  { %1279 = vtanh.f32 %v385_v0 }
 0x251   :  { %v1280_v2 = vpop.eup %1279 }
 0x252   :  { %1123 = vmatmul.mubr.msk.f32.vlgmr.msra.gmra.mrb[4].mxu0 %vm236_vm11, %v1280_v2 }
 0x253   :  { %1236 = vmatpush3.bf16.msra.mxu0 %v1389_v26  ;;  %1144 = vmatprep.mubr.msk.f32.mxu0 %vm1297_vm10, %v1296_v22 }
 0x254   :  { %1237 = vmatprep.subr.bf16.mxu0 %v1295_v15 }
 0x257   :  { %1239 = vmatpush3.bf16.msra.mxu0 %v1404_v34 }
 0x258   :  { %1246 = vmatprep.subr.bf16.mxu0 %v1295_v15 }
 0x325   :  { %v456_v3 = vpop.f32.mrb[4].mxu0 }
 0x326   :  { %v460_v4 = vadd.f32 %v456_v3, %v203_v61  ;;  %v1124_v5 = vpop.f32.mrb[5].mxu0 }
 0x328   :  { %1281 = vtanh.f32 %v460_v4 }
 0x332   :  { %v1282_v6 = vpop.eup %1281 }
 0x333   :  { %1134 = vmatmul.mubr.msk.f32.vlgmr.msra.gmra.mrb[8].mxu1 %vm236_vm11, %v1282_v6 }
 0x334   :  { %1242 = vmatpush3.bf16.msra.mxu1 %v1389_v26  ;;  %1155 = vmatprep.mubr.msk.f32.mxu1 %vm1297_vm10, %v1296_v22 }
 0x335   :  { %1243 = vmatprep.subr.bf16.mxu1 %v1295_v15 }
 0x338   :  { %1245 = vmatpush3.bf16.msra.mxu1 %v1404_v34 }
 0x339   :  { %1252 = vmatprep.subr.bf16.mxu1 %v1295_v15 }
 0x406   :  { %v531_v7 = vpop.f32.mrb[8].mxu1 }
 0x407   :  { %v535_v8 = vadd.f32 %v531_v7, %v208_v59  ;;  %v1135_v9 = vpop.f32.mrb[9].mxu1 }
 0x409   :  { %1283 = vtanh.f32 %v535_v8 }
 0x413   :  { %v1284_v10 = vpop.eup %1283 }
 0x414   :  { %1145 = vmatmul.mubr.msk.f32.vlgmr.msra.gmra.mrb[6].mxu0 %vm236_vm11, %v1284_v10 }
 0x415   :  { %1248 = vmatpush3.bf16.msra.mxu0 %v1389_v26  ;;  %1166 = vmatprep.mubr.msk.f32.mxu0 %vm1297_vm10, %v1296_v22 }
 0x416   :  { %1249 = vmatprep.subr.bf16.mxu0 %v1295_v15 }
 0x419   :  { %1251 = vmatpush3.bf16.msra.mxu0 %v1404_v34 }
 0x41a   :  { %1259 = vmatprep.subr.bf16.mxu0 %v1258_v18 }
 0x4e7   :  { %v606_v11 = vpop.f32.mrb[6].mxu0 }
 0x4e8   :  { %v610_v12 = vadd.f32 %v606_v11, %v213_v46  ;;  %v1146_v13 = vpop.f32.mrb[7].mxu0 }
 0x4ea   :  { %1285 = vtanh.f32 %v610_v12 }
 0x4f4   :  { %v1286_v14 = vpop.eup %1285 }
 0x4f5   :  { %1156 = vmatmul.mubr.msk.f32.vlgmr.msra.gmra.mrb[10].mxu1 %vm236_vm11, %v1286_v14 }
 0x4f6   :  { %1254 = vmatpush3.bf16.msra.mxu1 %v1389_v26  ;;  %1177 = vmatprep.mubr.msk.f32.mxu1 %vm1297_vm10, %v1296_v22  ;;  %v841_v22 = vld [vmem:[%s1542_s5 + $0x18] sm:$0xff] }
 0x4f7   :  { %1255 = vmatprep.subr.bf16.mxu1 %v1295_v15  ;;  %v840_v15 = vld [vmem:[%s1542_s5 + $0x10] sm:$0xff] }
 0x4f8   :  { %v1262_v23 = vpack.c.bf16 %v841_v22, %v840_v15 }
 0x4fa   :  { %1257 = vmatpush3.bf16.msra.mxu1 %v1404_v34 }
 0x5c8   :  { %v681_v19 = vpop.f32.mrb[10].mxu1 }
 0x5c9   :  { %v685_v20 = vadd.f32 %v681_v19, %v1438_v44  ;;  %v1157_v21 = vpop.f32.mrb[11].mxu1 }
 0x5cb   :  { %1287 = vtanh.f32 %v685_v20 }
 0x5d5   :  { %v1288_v24 = vpop.eup %1287 }
 0x5d6   :  { %1167 = vmatmul.mubr.msk.f32.vlgmr.msra.gmra.mrb[8].mxu0 %vm236_vm11, %v1288_v24 }
 0x5d7   :  { %1261 = vmatpush3.bf16.msra.mxu0 %v1258_v18  ;;  %1188 = vmatprep.mubr.msk.f32.mxu0 %vm236_vm11, %v1444_v62 }
 0x5d8   :  { %1263 = vmatprep.subr.bf16.mxu0 %v1262_v23 }
 0x5db   :  { %1265 = vmatpush3.bf16.msra.mxu0 %v1262_v23 }
 0x5de   :  { %1189 = vmatmul.mubr.msk.f32.vlgmr.msra.gmra.mrb[10].mxu0 %vm236_vm11, %v1280_v2 }
 0x5df   :  { %1191 = vmatprep.mubr.msk.f32.mxu0 %vm236_vm11, %v1282_v6 }
 0x5e2   :  { %1192 = vmatmul.mubr.msk.f32.gmra.mrb[12].mxu0 %vm236_vm11, %v1284_v10 }
 0x5e3   :  { %1194 = vmatprep.mubr.msk.f32.mxu0 %vm236_vm11, %v1286_v14 }
 0x5e6   :  { %1195 = vmatmul.mubr.msk.f32.gmra.mrb[14].mxu0 %vm236_vm11, %v1288_v24 }
 0x6a9   :  { %v756_v25 = vpop.f32.mrb[8].mxu0 }
 0x6aa   :  { %v760_v26 = vadd.f32 %v756_v25, %v1442_v54  ;;  %v1168_v27 = vpop.f32.mrb[9].mxu0 }
 0x6ac   :  { %1289 = vtanh.f32 %v760_v26 }
 0x6b1   :  { %v1190_v29 = vpop.f32.mrb[10].mxu0 }
 0x6b2   :  { %v924_v30 = vadd.f32 %v1190_v29, %v999_v28  ;;  %v918_v31 = vpop.f32.mrb[11].mxu0 }
 0x6b3   :  { %v919_v32 = vadd.f32 %v999_v28, %v918_v31 }
 0x6b4   :  { %958 = vst [vmem:[%s1544_s7 + $0x8] sm:$0xff] %v924_v30 }
 0x6b5   :  { %957 = vst [vmem:[%s1544_s7] sm:$0xff] %v919_v32  ;;  %v1193_v33 = vpop.f32.mrb[12].mxu0 }
 0x6b6   :  { %v1290_v34 = vpop.eup %1289  ;;  %v934_v35 = vadd.f32 %v1193_v33, %v999_v28  ;;  %v928_v36 = vpop.f32.mrb[13].mxu0 }
 0x6b7   :  { %v929_v37 = vadd.f32 %v999_v28, %v928_v36  ;;  %1178 = vmatmul.mubr.msk.f32.vlgmr.msra.gmra.mrb[12].mxu1 %vm236_vm11, %v1290_v34  ;;  %1197 = vmatprep.mubr.msk.f32.mxu0 %vm236_vm11, %v1290_v34 }
 0x6b8   :  { %960 = vst [vmem:[%s1544_s7 + $0x18] sm:$0xff] %v934_v35 }
 0x6b9   :  { %959 = vst [vmem:[%s1544_s7 + $0x10] sm:$0xff] %v929_v37  ;;  %v1196_v38 = vpop.f32.mrb[14].mxu0 }
 0x6ba   :  { %v944_v39 = vadd.f32 %v1196_v38, %v999_v28  ;;  %v938_v40 = vpop.f32.mrb[15].mxu0 }
 0x6bb   :  { %v939_v41 = vadd.f32 %v999_v28, %v938_v40 }
 0x6bc   :  { %962 = vst [vmem:[%s1544_s7 + $0x28] sm:$0xff] %v944_v39 }
 0x6bd   :  { %961 = vst [vmem:[%s1544_s7 + $0x20] sm:$0xff] %v939_v41 }
 0x78a   :  { %v831_v42 = vpop.f32.mrb[12].mxu1 }
 0x78b   :  { %v835_v43 = vadd.f32 %v831_v42, %v1440_v50  ;;  %v1179_v44 = vpop.f32.mrb[13].mxu1 }
 0x78d   :  { %1291 = vtanh.f32 %v835_v43 }
 0x797   :  { %v1292_v45 = vpop.eup %1291 }
 0x798   :  { %837 = vst.msk [vmem:[%s1545_s8] sm:$0xff] %vm236_vm11, %v1292_v45  ;;  %1198 = vmatmul.mubr.msk.f32.gmra.mrb[16].mxu0 %vm236_vm11, %v1292_v45 }
 0x86b   :  { %v1199_v46 = vpop.f32.mrb[16].mxu0 }
 0x86c   :  { %v954_v47 = vadd.f32 %v1199_v46, %v999_v28  ;;  %v948_v48 = vpop.f32.mrb[17].mxu0 }
 0x86d   :  { %v949_v49 = vadd.f32 %v999_v28, %v948_v48 }
 0x86e   :  { %964 = vst [vmem:[%s1544_s7 + $0x38] sm:$0xff] %v954_v47 }
 0x86f   :  { %963 = vst [vmem:[%s1544_s7 + $0x30] sm:$0xff] %v949_v49 }

</bundles_post_ra>
